<compile_context>
chip_gen: v7x
topology: tpu7x:2x2x1
jax: 0.10.0
libtpu: 0.0.40
codegen_flags: <defaults>
</compile_context>

<pallas_src>
import functools

import jax
import jax.numpy as jnp
from jax.experimental import pallas as pl
from jax.experimental import pallas as pallas  # noqa: F401 (clarity only)
from jax.experimental.pallas import tpu as pltpu


def _round_up(x, m):
    return ((x + m - 1) // m) * m


# ------------------------------ Fused kernel -------------------------------

def _fused_autoencoder_kernel(x_ref, w_ref, b_ref, out_ref, *, input_dim):
    """All 9 Linear(+ReLU) layers of encoder / y-net / decoder in one body.

    w_ref: (10, PW, PW) zero-padded weight stack
    b_ref: (10, 1,  PW) zero-padded bias stack (slot 7 is all-zero)
    Layout of the stack (decoder layer 0 is row-split into slots 6 / 7):
      0..2 encoder, 3..5 y-network, 6 dec0[z-rows], 7 dec0[y-rows], 8 dec1, 9 dec2
    """

    def lin(h, i):
        return jnp.dot(h, w_ref[i], preferred_element_type=jnp.float32) + b_ref[i]

    x = x_ref[...].astype(jnp.float32)

    # ---- encoder ----
    h = jnp.maximum(lin(x, 0), 0.0)
    h = jnp.maximum(lin(h, 1), 0.0)
    z = lin(h, 2)                              # Dropout == identity (inference)

    # ---- y network ----
    h = jnp.maximum(lin(z, 3), 0.0)
    h = jnp.maximum(lin(h, 4), 0.0)
    y = lin(h, 5)                              # Dropout == identity (inference)

    # ---- decoder: cat([z, y], dim=1) folded into the row-split slots 6/7 ----
    h = jnp.maximum(lin(z, 6) + lin(y, 7), 0.0)   # b_ref[7] == 0
    h = jnp.maximum(lin(h, 8), 0.0)
    slab = lin(h, 9)                           # recon_x in cols [0, input_dim)

    # y_pred placement: padded columns of both `slab` and `y` are exactly zero,
    # so an XLU lane-roll of y by input_dim + a VPU add drops y_pred into
    # columns [input_dim, input_dim + outcome_dim) with one unmasked store.
    out_ref[...] = (slab + pltpu.roll(y, shift=input_dim, axis=1)).astype(out_ref.dtype)


# --------------------------- Parameter creation ----------------------------

def init_params(key, input_dim, hidden_dim, latent_dim, outcome_dim):
    """Deterministic init mimicking nn.Linear's U(-1/sqrt(fan_in), 1/sqrt(fan_in))."""
    layer_shapes = {
        "enc": [(input_dim, hidden_dim),
                (hidden_dim, hidden_dim),
                (hidden_dim, latent_dim)],
        "ynet": [(latent_dim, hidden_dim),
                 (hidden_dim, hidden_dim),
                 (hidden_dim, outcome_dim)],
        "dec": [(latent_dim + outcome_dim, hidden_dim),
                (hidden_dim, hidden_dim),
                (hidden_dim, input_dim)],
    }
    params = {}
    for name, shapes in layer_shapes.items():
        layers = []
        for (din, dout) in shapes:
            key, kw, kb = jax.random.split(key, 3)
            bound = 1.0 / float(din) ** 0.5
            w = jax.random.uniform(kw, (din, dout), jnp.float32, -bound, bound)
            b = jax.random.uniform(kb, (dout,), jnp.float32, -bound, bound)
            layers.append((w, b))
        params[name] = layers
    return params


# ------------------------------ Forward pass -------------------------------

@jax.jit
def autoencoder_forward(params, x, l2_reg):
    bsz, input_dim = x.shape
    hidden_dim = params["enc"][0][0].shape[1]
    latent_dim = params["enc"][2][0].shape[1]
    outcome_dim = params["ynet"][2][0].shape[1]

    # Common lane-dense padded width for every activation / weight tile.
    pw = _round_up(max(input_dim + outcome_dim, hidden_dim, latent_dim, input_dim), 128)

    # Batch tiling: parallel grid axis (engages v7x's 2nd TensorCore and
    # double-buffers the x/out stream for large batches).
    tb = min(128, _round_up(bsz, 8))
    padded_b = _round_up(bsz, tb)
    grid = (padded_b // tb,)

    # ---- host-side packing: 3 inputs total (x, weight stack, bias stack) ----
    def pad_w(w):
        return jnp.pad(w, ((0, pw - w.shape[0]), (0, pw - w.shape[1])))

    def pad_b(b):
        return jnp.pad(b, (0, pw - b.shape[0])).reshape(1, pw)

    enc, ynet, dec = params["enc"], params["ynet"], params["dec"]
    dw0, db0 = dec[0]
    weights = [enc[0][0], enc[1][0], enc[2][0],
               ynet[0][0], ynet[1][0], ynet[2][0],
               dw0[:latent_dim], dw0[latent_dim:], dec[1][0], dec[2][0]]
    biases = [enc[0][1], enc[1][1], enc[2][1],
              ynet[0][1], ynet[1][1], ynet[2][1],
              db0, jnp.zeros_like(db0), dec[1][1], dec[2][1]]

    w_stack = jnp.stack([pad_w(w) for w in weights])          # (10, pw, pw)
    b_stack = jnp.stack([pad_b(b) for b in biases])           # (10, 1, pw)
    x_pad = jnp.pad(x, ((0, padded_b - bsz), (0, pw - input_dim)))

    flops = 2 * padded_b * 10 * pw * pw
    bytes_accessed = 4 * (w_stack.size + b_stack.size + 2 * padded_b * pw)

    slab = pl.pallas_call(
        functools.partial(_fused_autoencoder_kernel, input_dim=input_dim),
        out_shape=jax.ShapeDtypeStruct((padded_b, pw), x.dtype),
        grid=grid,
        in_specs=[
            pl.BlockSpec((tb, pw), lambda i: (i, 0)),
            pl.BlockSpec((10, pw, pw), lambda i: (0, 0, 0)),
            pl.BlockSpec((10, 1, pw), lambda i: (0, 0, 0)),
        ],
        out_specs=pl.BlockSpec((tb, pw), lambda i: (i, 0)),
        compiler_params=pltpu.CompilerParams(dimension_semantics=("parallel",)),
        cost_estimate=pl.CostEstimate(
            flops=flops, transcendentals=0, bytes_accessed=bytes_accessed),
    )(x_pad, w_stack, b_stack)

    recon_x = slab[:bsz, :input_dim]
    y_pred = slab[:bsz, input_dim:input_dim + outcome_dim]

    # L2 regularizer is independent of x — plain JAX, outside the kernel.
    l2 = jnp.float32(0.0)
    for layers in params.values():
        for (w, b) in layers:
            l2 = l2 + jnp.linalg.norm(w) + jnp.linalg.norm(b)

    return recon_x, y_pred, l2_reg * l2


# --------------------------- Pure-JAX reference ----------------------------

def _reference_forward(params, x, l2_reg):
    def mlp3(h, layers):
        for i, (w, b) in enumerate(layers):
            h = jnp.dot(h, w, precision="highest") + b
            if i < 2:
                h = jnp.maximum(h, 0.0)
        return h

    z = mlp3(x, params["enc"])
    y_pred = mlp3(z, params["ynet"])
    recon_x = mlp3(jnp.concatenate([z, y_pred], axis=1), params["dec"])
    l2 = jnp.float32(0.0)
    for layers in params.values():
        for (w, b) in layers:
            l2 = l2 + jnp.linalg.norm(w) + jnp.linalg.norm(b)
    return recon_x, y_pred, l2_reg * l2


# ---------------------------------- Main -----------------------------------

if __name__ == "__main__":
    batch = 8
    input_dim = 32
    hidden_dim = 64
    latent_dim = 16
    outcome_dim = 8
    dropout_prob = 0.1   # identity at inference
    l2_reg = 1e-4

    key = jax.random.PRNGKey(0)
    k_param, k_x = jax.random.split(key)

    params = init_params(k_param, input_dim, hidden_dim, latent_dim, outcome_dim)
    x = jax.random.normal(k_x, (batch, input_dim), jnp.float32)

    recon_x, y_pred, l2_term = autoencoder_forward(params, x, l2_reg)
    jax.block_until_ready((recon_x, y_pred, l2_term))

    assert recon_x.shape == (batch, input_dim)
    assert y_pred.shape == (batch, outcome_dim)
    assert l2_term.shape == ()

    # Numerical sanity check against a plain-JAX reference.
    r_ref, y_ref, l2_ref_val = _reference_forward(params, x, l2_reg)
    assert jnp.allclose(recon_x, r_ref, rtol=5e-2, atol=5e-2)
    assert jnp.allclose(y_pred, y_ref, rtol=5e-2, atol=5e-2)
    assert jnp.allclose(l2_term, l2_ref_val, rtol=5e-2, atol=5e-2)

    print("KERNEL_OK")
</pallas_src>

<mosaic_0001>
module attributes {stable_mosaic.version = 11 : i64} {
  func.func @_fused_autoencoder_kernel(%arg0: i32, %arg1: memref<8x128xf32, #tpu.memory_space<vmem>>, %arg2: memref<10x128x128xf32, #tpu.memory_space<vmem>>, %arg3: memref<10x1x128xf32, #tpu.memory_space<vmem>>, %arg4: memref<8x128xf32, #tpu.memory_space<vmem>>) attributes {dimension_semantics = [#tpu.dimension_semantics<parallel>], iteration_bounds = array<i64: 1>, scalar_prefetch = 0 : i64, scratch_operands = 0 : i64, tpu.core_type = #tpu.core_type<tc>, window_params = [{transform_indices = @transform_0, window_bounds = array<i64: 8, 128>}, {pipeline_mode = #tpu.pipeline_mode<synchronous>, transform_indices = @transform_1, window_bounds = array<i64: 10, 128, 128>}, {pipeline_mode = #tpu.pipeline_mode<synchronous>, transform_indices = @transform_2, window_bounds = array<i64: 10, 1, 128>}, {transform_indices = @transform_3, window_bounds = array<i64: 8, 128>}]} {
    %c0 = arith.constant 0 : index
    %c0_0 = arith.constant 0 : index
    %0 = vector.load %arg1[%c0, %c0_0] : memref<8x128xf32, #tpu.memory_space<vmem>>, vector<8x128xf32>
    %c0_1 = arith.constant 0 : index
    %c0_2 = arith.constant 0 : index
    %c0_3 = arith.constant 0 : index
    %1 = vector.load %arg2[%c0_1, %c0_2, %c0_3] : memref<10x128x128xf32, #tpu.memory_space<vmem>>, vector<1x128x128xf32>
    %2 = vector.shape_cast %1 : vector<1x128x128xf32> to vector<128x128xf32>
    %cst = arith.constant dense<0.000000e+00> : vector<8x128xf32>
    %3 = tpu.matmul %0, %2, %cst {dimension_numbers = #tpu.dot_dimension_numbers<[1], [0], [0], [1], [0, 0, 1, 1], [], []>} : vector<8x128xf32>, vector<128x128xf32>, vector<8x128xf32> -> vector<8x128xf32>
    %c0_4 = arith.constant 0 : index
    %c0_5 = arith.constant 0 : index
    %c0_6 = arith.constant 0 : index
    %4 = vector.load %arg3[%c0_4, %c0_5, %c0_6] : memref<10x1x128xf32, #tpu.memory_space<vmem>>, vector<1x1x128xf32>
    %5 = vector.shape_cast %4 : vector<1x1x128xf32> to vector<1x128xf32>
    %6 = vector.broadcast %5 : vector<1x128xf32> to vector<8x128xf32>
    %7 = arith.addf %3, %6 : vector<8x128xf32>
    %cst_7 = arith.constant 0.000000e+00 : f32
    %8 = vector.broadcast %cst_7 : f32 to vector<8x128xf32>
    %9 = arith.maximumf %7, %8 : vector<8x128xf32>
    %c1 = arith.constant 1 : index
    %c0_8 = arith.constant 0 : index
    %c0_9 = arith.constant 0 : index
    %10 = vector.load %arg2[%c1, %c0_8, %c0_9] : memref<10x128x128xf32, #tpu.memory_space<vmem>>, vector<1x128x128xf32>
    %11 = vector.shape_cast %10 : vector<1x128x128xf32> to vector<128x128xf32>
    %cst_10 = arith.constant dense<0.000000e+00> : vector<8x128xf32>
    %12 = tpu.matmul %9, %11, %cst_10 {dimension_numbers = #tpu.dot_dimension_numbers<[1], [0], [0], [1], [0, 0, 1, 1], [], []>} : vector<8x128xf32>, vector<128x128xf32>, vector<8x128xf32> -> vector<8x128xf32>
    %c1_11 = arith.constant 1 : index
    %c0_12 = arith.constant 0 : index
    %c0_13 = arith.constant 0 : index
    %13 = vector.load %arg3[%c1_11, %c0_12, %c0_13] : memref<10x1x128xf32, #tpu.memory_space<vmem>>, vector<1x1x128xf32>
    %14 = vector.shape_cast %13 : vector<1x1x128xf32> to vector<1x128xf32>
    %15 = vector.broadcast %14 : vector<1x128xf32> to vector<8x128xf32>
    %16 = arith.addf %12, %15 : vector<8x128xf32>
    %cst_14 = arith.constant 0.000000e+00 : f32
    %17 = vector.broadcast %cst_14 : f32 to vector<8x128xf32>
    %18 = arith.maximumf %16, %17 : vector<8x128xf32>
    %c2 = arith.constant 2 : index
    %c0_15 = arith.constant 0 : index
    %c0_16 = arith.constant 0 : index
    %19 = vector.load %arg2[%c2, %c0_15, %c0_16] : memref<10x128x128xf32, #tpu.memory_space<vmem>>, vector<1x128x128xf32>
    %20 = vector.shape_cast %19 : vector<1x128x128xf32> to vector<128x128xf32>
    %cst_17 = arith.constant dense<0.000000e+00> : vector<8x128xf32>
    %21 = tpu.matmul %18, %20, %cst_17 {dimension_numbers = #tpu.dot_dimension_numbers<[1], [0], [0], [1], [0, 0, 1, 1], [], []>} : vector<8x128xf32>, vector<128x128xf32>, vector<8x128xf32> -> vector<8x128xf32>
    %c2_18 = arith.constant 2 : index
    %c0_19 = arith.constant 0 : index
    %c0_20 = arith.constant 0 : index
    %22 = vector.load %arg3[%c2_18, %c0_19, %c0_20] : memref<10x1x128xf32, #tpu.memory_space<vmem>>, vector<1x1x128xf32>
    %23 = vector.shape_cast %22 : vector<1x1x128xf32> to vector<1x128xf32>
    %24 = vector.broadcast %23 : vector<1x128xf32> to vector<8x128xf32>
    %25 = arith.addf %21, %24 : vector<8x128xf32>
    %c3 = arith.constant 3 : index
    %c0_21 = arith.constant 0 : index
    %c0_22 = arith.constant 0 : index
    %26 = vector.load %arg2[%c3, %c0_21, %c0_22] : memref<10x128x128xf32, #tpu.memory_space<vmem>>, vector<1x128x128xf32>
    %27 = vector.shape_cast %26 : vector<1x128x128xf32> to vector<128x128xf32>
    %cst_23 = arith.constant dense<0.000000e+00> : vector<8x128xf32>
    %28 = tpu.matmul %25, %27, %cst_23 {dimension_numbers = #tpu.dot_dimension_numbers<[1], [0], [0], [1], [0, 0, 1, 1], [], []>} : vector<8x128xf32>, vector<128x128xf32>, vector<8x128xf32> -> vector<8x128xf32>
    %c3_24 = arith.constant 3 : index
    %c0_25 = arith.constant 0 : index
    %c0_26 = arith.constant 0 : index
    %29 = vector.load %arg3[%c3_24, %c0_25, %c0_26] : memref<10x1x128xf32, #tpu.memory_space<vmem>>, vector<1x1x128xf32>
    %30 = vector.shape_cast %29 : vector<1x1x128xf32> to vector<1x128xf32>
    %31 = vector.broadcast %30 : vector<1x128xf32> to vector<8x128xf32>
    %32 = arith.addf %28, %31 : vector<8x128xf32>
    %cst_27 = arith.constant 0.000000e+00 : f32
    %33 = vector.broadcast %cst_27 : f32 to vector<8x128xf32>
    %34 = arith.maximumf %32, %33 : vector<8x128xf32>
    %c4 = arith.constant 4 : index
    %c0_28 = arith.constant 0 : index
    %c0_29 = arith.constant 0 : index
    %35 = vector.load %arg2[%c4, %c0_28, %c0_29] : memref<10x128x128xf32, #tpu.memory_space<vmem>>, vector<1x128x128xf32>
    %36 = vector.shape_cast %35 : vector<1x128x128xf32> to vector<128x128xf32>
    %cst_30 = arith.constant dense<0.000000e+00> : vector<8x128xf32>
    %37 = tpu.matmul %34, %36, %cst_30 {dimension_numbers = #tpu.dot_dimension_numbers<[1], [0], [0], [1], [0, 0, 1, 1], [], []>} : vector<8x128xf32>, vector<128x128xf32>, vector<8x128xf32> -> vector<8x128xf32>
    %c4_31 = arith.constant 4 : index
    %c0_32 = arith.constant 0 : index
    %c0_33 = arith.constant 0 : index
    %38 = vector.load %arg3[%c4_31, %c0_32, %c0_33] : memref<10x1x128xf32, #tpu.memory_space<vmem>>, vector<1x1x128xf32>
    %39 = vector.shape_cast %38 : vector<1x1x128xf32> to vector<1x128xf32>
    %40 = vector.broadcast %39 : vector<1x128xf32> to vector<8x128xf32>
    %41 = arith.addf %37, %40 : vector<8x128xf32>
    %cst_34 = arith.constant 0.000000e+00 : f32
    %42 = vector.broadcast %cst_34 : f32 to vector<8x128xf32>
    %43 = arith.maximumf %41, %42 : vector<8x128xf32>
    %c5 = arith.constant 5 : index
    %c0_35 = arith.constant 0 : index
    %c0_36 = arith.constant 0 : index
    %44 = vector.load %arg2[%c5, %c0_35, %c0_36] : memref<10x128x128xf32, #tpu.memory_space<vmem>>, vector<1x128x128xf32>
    %45 = vector.shape_cast %44 : vector<1x128x128xf32> to vector<128x128xf32>
    %cst_37 = arith.constant dense<0.000000e+00> : vector<8x128xf32>
    %46 = tpu.matmul %43, %45, %cst_37 {dimension_numbers = #tpu.dot_dimension_numbers<[1], [0], [0], [1], [0, 0, 1, 1], [], []>} : vector<8x128xf32>, vector<128x128xf32>, vector<8x128xf32> -> vector<8x128xf32>
    %c5_38 = arith.constant 5 : index
    %c0_39 = arith.constant 0 : index
    %c0_40 = arith.constant 0 : index
    %47 = vector.load %arg3[%c5_38, %c0_39, %c0_40] : memref<10x1x128xf32, #tpu.memory_space<vmem>>, vector<1x1x128xf32>
    %48 = vector.shape_cast %47 : vector<1x1x128xf32> to vector<1x128xf32>
    %49 = vector.broadcast %48 : vector<1x128xf32> to vector<8x128xf32>
    %50 = arith.addf %46, %49 : vector<8x128xf32>
    %c6 = arith.constant 6 : index
    %c0_41 = arith.constant 0 : index
    %c0_42 = arith.constant 0 : index
    %51 = vector.load %arg2[%c6, %c0_41, %c0_42] : memref<10x128x128xf32, #tpu.memory_space<vmem>>, vector<1x128x128xf32>
    %52 = vector.shape_cast %51 : vector<1x128x128xf32> to vector<128x128xf32>
    %cst_43 = arith.constant dense<0.000000e+00> : vector<8x128xf32>
    %53 = tpu.matmul %25, %52, %cst_43 {dimension_numbers = #tpu.dot_dimension_numbers<[1], [0], [0], [1], [0, 0, 1, 1], [], []>} : vector<8x128xf32>, vector<128x128xf32>, vector<8x128xf32> -> vector<8x128xf32>
    %c6_44 = arith.constant 6 : index
    %c0_45 = arith.constant 0 : index
    %c0_46 = arith.constant 0 : index
    %54 = vector.load %arg3[%c6_44, %c0_45, %c0_46] : memref<10x1x128xf32, #tpu.memory_space<vmem>>, vector<1x1x128xf32>
    %55 = vector.shape_cast %54 : vector<1x1x128xf32> to vector<1x128xf32>
    %56 = vector.broadcast %55 : vector<1x128xf32> to vector<8x128xf32>
    %57 = arith.addf %53, %56 : vector<8x128xf32>
    %c7 = arith.constant 7 : index
    %c0_47 = arith.constant 0 : index
    %c0_48 = arith.constant 0 : index
    %58 = vector.load %arg2[%c7, %c0_47, %c0_48] : memref<10x128x128xf32, #tpu.memory_space<vmem>>, vector<1x128x128xf32>
    %59 = vector.shape_cast %58 : vector<1x128x128xf32> to vector<128x128xf32>
    %cst_49 = arith.constant dense<0.000000e+00> : vector<8x128xf32>
    %60 = tpu.matmul %50, %59, %cst_49 {dimension_numbers = #tpu.dot_dimension_numbers<[1], [0], [0], [1], [0, 0, 1, 1], [], []>} : vector<8x128xf32>, vector<128x128xf32>, vector<8x128xf32> -> vector<8x128xf32>
    %c7_50 = arith.constant 7 : index
    %c0_51 = arith.constant 0 : index
    %c0_52 = arith.constant 0 : index
    %61 = vector.load %arg3[%c7_50, %c0_51, %c0_52] : memref<10x1x128xf32, #tpu.memory_space<vmem>>, vector<1x1x128xf32>
    %62 = vector.shape_cast %61 : vector<1x1x128xf32> to vector<1x128xf32>
    %63 = vector.broadcast %62 : vector<1x128xf32> to vector<8x128xf32>
    %64 = arith.addf %60, %63 : vector<8x128xf32>
    %65 = arith.addf %57, %64 : vector<8x128xf32>
    %cst_53 = arith.constant 0.000000e+00 : f32
    %66 = vector.broadcast %cst_53 : f32 to vector<8x128xf32>
    %67 = arith.maximumf %65, %66 : vector<8x128xf32>
    %c8 = arith.constant 8 : index
    %c0_54 = arith.constant 0 : index
    %c0_55 = arith.constant 0 : index
    %68 = vector.load %arg2[%c8, %c0_54, %c0_55] : memref<10x128x128xf32, #tpu.memory_space<vmem>>, vector<1x128x128xf32>
    %69 = vector.shape_cast %68 : vector<1x128x128xf32> to vector<128x128xf32>
    %cst_56 = arith.constant dense<0.000000e+00> : vector<8x128xf32>
    %70 = tpu.matmul %67, %69, %cst_56 {dimension_numbers = #tpu.dot_dimension_numbers<[1], [0], [0], [1], [0, 0, 1, 1], [], []>} : vector<8x128xf32>, vector<128x128xf32>, vector<8x128xf32> -> vector<8x128xf32>
    %c8_57 = arith.constant 8 : index
    %c0_58 = arith.constant 0 : index
    %c0_59 = arith.constant 0 : index
    %71 = vector.load %arg3[%c8_57, %c0_58, %c0_59] : memref<10x1x128xf32, #tpu.memory_space<vmem>>, vector<1x1x128xf32>
    %72 = vector.shape_cast %71 : vector<1x1x128xf32> to vector<1x128xf32>
    %73 = vector.broadcast %72 : vector<1x128xf32> to vector<8x128xf32>
    %74 = arith.addf %70, %73 : vector<8x128xf32>
    %cst_60 = arith.constant 0.000000e+00 : f32
    %75 = vector.broadcast %cst_60 : f32 to vector<8x128xf32>
    %76 = arith.maximumf %74, %75 : vector<8x128xf32>
    %c9 = arith.constant 9 : index
    %c0_61 = arith.constant 0 : index
    %c0_62 = arith.constant 0 : index
    %77 = vector.load %arg2[%c9, %c0_61, %c0_62] : memref<10x128x128xf32, #tpu.memory_space<vmem>>, vector<1x128x128xf32>
    %78 = vector.shape_cast %77 : vector<1x128x128xf32> to vector<128x128xf32>
    %cst_63 = arith.constant dense<0.000000e+00> : vector<8x128xf32>
    %79 = tpu.matmul %76, %78, %cst_63 {dimension_numbers = #tpu.dot_dimension_numbers<[1], [0], [0], [1], [0, 0, 1, 1], [], []>} : vector<8x128xf32>, vector<128x128xf32>, vector<8x128xf32> -> vector<8x128xf32>
    %c9_64 = arith.constant 9 : index
    %c0_65 = arith.constant 0 : index
    %c0_66 = arith.constant 0 : index
    %80 = vector.load %arg3[%c9_64, %c0_65, %c0_66] : memref<10x1x128xf32, #tpu.memory_space<vmem>>, vector<1x1x128xf32>
    %81 = vector.shape_cast %80 : vector<1x1x128xf32> to vector<1x128xf32>
    %82 = vector.broadcast %81 : vector<1x128xf32> to vector<8x128xf32>
    %83 = arith.addf %79, %82 : vector<8x128xf32>
    %c32_i32 = arith.constant 32 : i32
    %84 = tpu.dynamic_rotate %50 by %c32_i32 dim 1 : vector<8x128xf32>, i32 -> vector<8x128xf32>
    %85 = arith.addf %83, %84 : vector<8x128xf32>
    %c0_67 = arith.constant 0 : index
    %c0_68 = arith.constant 0 : index
    %86 = vector.load %arg4[%c0_67, %c0_68] : memref<8x128xf32, #tpu.memory_space<vmem>>, vector<8x128xf32>
    tpu.vector_store %arg4[%c0_67, %c0_68], %85 {strides = array<i32>} : memref<8x128xf32, #tpu.memory_space<vmem>>, vector<8x128xf32>,
    return
  }
  func.func @transform_0(%arg0: i32) -> (i32, i32) {
    %c0_i32 = arith.constant 0 : i32
    %c0_i32_0 = arith.constant 0 : i32
    return %arg0, %c0_i32 : i32, i32
  }
  func.func @transform_1(%arg0: i32) -> (i32, i32, i32) {
    %c0_i32 = arith.constant 0 : i32
    %c0_i32_0 = arith.constant 0 : i32
    %c0_i32_1 = arith.constant 0 : i32
    %c0_i32_2 = arith.constant 0 : i32
    return %c0_i32, %c0_i32_0, %c0_i32_1 : i32, i32, i32
  }
  func.func @transform_2(%arg0: i32) -> (i32, i32, i32) {
    %c0_i32 = arith.constant 0 : i32
    %c0_i32_0 = arith.constant 0 : i32
    %c0_i32_1 = arith.constant 0 : i32
    %c0_i32_2 = arith.constant 0 : i32
    return %c0_i32, %c0_i32_0, %c0_i32_1 : i32, i32, i32
  }
  func.func @transform_3(%arg0: i32) -> (i32, i32) {
    %c0_i32 = arith.constant 0 : i32
    %c0_i32_0 = arith.constant 0 : i32
    return %arg0, %c0_i32 : i32, i32
  }
}

</mosaic_0001>

<bundles_post_ra>
// kernel: autoencoder_forward.1
= control target key start
LH: loop header
LB: loop body
LE: loop exit
PB: predicated region body
PF: predicated region fallthrough
CT: control target
= control target key end

     0   :  { %v1909_v0 = vmov 0.0|0.0   ;;  %vm1910_vm0 = vmmov 0   ;;  %v1911_v4 = vmov 0.0   ;;  %s2553_s1 = inlined_call_operand.vmem [shape: f32[10,128,128], index: 1, kind: input, shape index: {}]   ;;  %s2554_s0 = inlined_call_operand.vmem [shape: f32[8,128], index: 0, kind: input, shape index: {}]   ;;  %s2555_s2 = inlined_call_operand.vmem [shape: f32[10,1,128], index: 2, kind: input, shape index: {}]   ;;  %s2556_s3 = inlined_call_operand.vmem [shape: f32[8,128], index: 3, kind: output, shape index: {}]  }
   0x1   :  { %1661 = vmatprep.subr.bf16.mxu0 %v1909_v0  ;;  %v15_v1 = vld [vmem:[%s2553_s1] sm:$0xff]  ;;  %v16_v2 = vld [vmem:[%s2553_s1 + $0x8] sm:$0xff]  ;;  %v17_v3 = vld [vmem:[%s2553_s1 + $0x10] sm:$0xff]  ;;  %1343 = vmatprep.mubr.msk.f32.mxu0 %vm1910_vm0, %v1911_v4 }
   0x2   :  { %v1662_v5 = vpack.c.bf16 %v16_v2, %v15_v1  ;;  %v18_v6 = vld [vmem:[%s2553_s1 + $0x18] sm:$0xff]  ;;  %1685 = vmatprep.subr.bf16.mxu1 %v1909_v0  ;;  %1378 = vmatprep.mubr.msk.f32.mxu1 %vm1910_vm0, %v1911_v4  ;;  %v19_v8 = vld [vmem:[%s2553_s1 + $0x20] sm:$0xff]  ;;  %v20_v9 = vld [vmem:[%s2553_s1 + $0x28] sm:$0xff] }
   0x3   :  { %v1665_v7 = vpack.c.bf16 %v18_v6, %v17_v3  ;;  %v979_v10 = vld [vmem:[%s2553_s1 + $0x80] sm:$0xff]  ;;  %v980_v11 = vld [vmem:[%s2553_s1 + $0x88] sm:$0xff]  ;;  %v981_v12 = vld [vmem:[%s2553_s1 + $0x90] sm:$0xff]  ;;  %v1668_v14 = vpack.c.bf16 %v20_v9, %v19_v8 }
   0x4   :  { %1663 = vmatpush3.bf16.msra.mxu0 %v1662_v5  ;;  %v982_v13 = vld [vmem:[%s2553_s1 + $0x98] sm:$0xff]  ;;  %v1686_v15 = vpack.c.bf16 %v980_v11, %v979_v10  ;;  %v21_v16 = vld [vmem:[%s2553_s1 + $0x30] sm:$0xff]  ;;  %v983_v19 = vld [vmem:[%s2553_s1 + $0xa0] sm:$0xff] }
   0x5   :  { %1664 = vmatprep.subr.bf16.mxu0 %v1909_v0  ;;  %v22_v17 = vld [vmem:[%s2553_s1 + $0x38] sm:$0xff]  ;;  %v1689_v18 = vpack.c.bf16 %v982_v13, %v981_v12  ;;  %v984_v20 = vld [vmem:[%s2553_s1 + $0xa8] sm:$0xff]  ;;  %v23_v22 = vld [vmem:[%s2553_s1 + $0x40] sm:$0xff] }
   0x6   :  { %1687 = vmatpush3.bf16.msra.mxu1 %v1686_v15  ;;  %v1671_v21 = vpack.c.bf16 %v22_v17, %v21_v16  ;;  %v24_v23 = vld [vmem:[%s2553_s1 + $0x48] sm:$0xff]  ;;  %v1692_v24 = vpack.c.bf16 %v984_v20, %v983_v19  ;;  %v985_v25 = vld [vmem:[%s2553_s1 + $0xb0] sm:$0xff]  ;;  %v986_v26 = vld [vmem:[%s2553_s1 + $0xb8] sm:$0xff] }
   0x7   :  { %1688 = vmatprep.subr.bf16.mxu1 %v1909_v0  ;;  %v1674_v27 = vpack.c.bf16 %v24_v23, %v23_v22  ;;  %v25_v28 = vld [vmem:[%s2553_s1 + $0x50] sm:$0xff]  ;;  %v26_v29 = vld [vmem:[%s2553_s1 + $0x58] sm:$0xff]  ;;  %v1695_v30 = vpack.c.bf16 %v986_v26, %v985_v25  ;;  %v987_v31 = vld [vmem:[%s2553_s1 + $0xc0] sm:$0xff] }
   0x8   :  { %1666 = vmatpush3.bf16.msra.mxu0 %v1665_v7  ;;  %v988_v32 = vld [vmem:[%s2553_s1 + $0xc8] sm:$0xff]  ;;  %v1677_v33 = vpack.c.bf16 %v26_v29, %v25_v28  ;;  %v27_v34 = vld [vmem:[%s2553_s1 + $0x60] sm:$0xff]  ;;  %v989_v37 = vld [vmem:[%s2553_s1 + $0xd0] sm:$0xff] }
   0x9   :  { %1667 = vmatprep.subr.bf16.mxu0 %v1909_v0  ;;  %v28_v35 = vld [vmem:[%s2553_s1 + $0x68] sm:$0xff]  ;;  %v1698_v36 = vpack.c.bf16 %v988_v32, %v987_v31  ;;  %v990_v38 = vld [vmem:[%s2553_s1 + $0xd8] sm:$0xff]  ;;  %v29_v40 = vld [vmem:[%s2553_s1 + $0x70] sm:$0xff] }
   0xa   :  { %1690 = vmatpush3.bf16.msra.mxu1 %v1689_v18  ;;  %v1680_v39 = vpack.c.bf16 %v28_v35, %v27_v34  ;;  %v30_v41 = vld [vmem:[%s2553_s1 + $0x78] sm:$0xff]  ;;  %v1701_v42 = vpack.c.bf16 %v990_v38, %v989_v37  ;;  %v991_v43 = vld [vmem:[%s2553_s1 + $0xe0] sm:$0xff]  ;;  %v992_v44 = vld [vmem:[%s2553_s1 + $0xe8] sm:$0xff] }
   0xb   :  { %1691 = vmatprep.subr.bf16.mxu1 %v1909_v0  ;;  %v1683_v45 = vpack.c.bf16 %v30_v41, %v29_v40  ;;  %v1704_v46 = vpack.c.bf16 %v992_v44, %v991_v43  ;;  %v14_v47 = vld [vmem:[%s2554_s0] sm:$0xff]  ;;  %v993_v48 = vld [vmem:[%s2553_s1 + $0xf0] sm:$0xff]  ;;  %v994_v49 = vld [vmem:[%s2553_s1 + $0xf8] sm:$0xff]  ;;  %s1912_s0 = smov 32  }
   0xc   :  { %1669 = vmatpush3.bf16.msra.mxu0 %v1668_v14  ;;  %v1707_v50 = vpack.c.bf16 %v994_v49, %v993_v48  ;;  %v997_v51 = vld [vmem:[%s2553_s1 + $0x100] sm:$0xff]  ;;  %v998_v52 = vld [vmem:[%s2553_s1 + $0x108] sm:$0xff]  ;;  %v999_v53 = vld [vmem:[%s2553_s1 + $0x110] sm:$0xff] }
   0xd   :  { %1670 = vmatprep.subr.bf16.mxu0 %v1909_v0  ;;  %v1710_v54 = vpack.c.bf16 %v998_v52, %v997_v51  ;;  %v1000_v55 = vld [vmem:[%s2553_s1 + $0x118] sm:$0xff]  ;;  %v1001_v57 = vld [vmem:[%s2553_s1 + $0x120] sm:$0xff]  ;;  %v1002_v58 = vld [vmem:[%s2553_s1 + $0x128] sm:$0xff] }
   0xe   :  { %1693 = vmatpush3.bf16.msra.mxu1 %v1692_v24  ;;  %v1713_v56 = vpack.c.bf16 %v1000_v55, %v999_v53  ;;  %v1716_v59 = vpack.c.bf16 %v1002_v58, %v1001_v57  ;;  %v1003_v60 = vld [vmem:[%s2553_s1 + $0x130] sm:$0xff]  ;;  %v1004_v61 = vld [vmem:[%s2553_s1 + $0x138] sm:$0xff]  ;;  %v1005_v63 = vld [vmem:[%s2553_s1 + $0x140] sm:$0xff] }
   0xf   :  { %1694 = vmatprep.subr.bf16.mxu1 %v1909_v0  ;;  %v1719_v62 = vpack.c.bf16 %v1004_v61, %v1003_v60  ;;  %v1006_v1 = vld [vmem:[%s2553_s1 + $0x148] sm:$0xff]  ;;  %v1007_v3 = vld [vmem:[%s2553_s1 + $0x150] sm:$0xff]  ;;  %v1008_v5 = vld [vmem:[%s2553_s1 + $0x158] sm:$0xff] }
  0x10   :  { %1672 = vmatpush3.bf16.msra.mxu0 %v1671_v21  ;;  %v1722_v2 = vpack.c.bf16 %v1006_v1, %v1005_v63  ;;  %v1725_v6 = vpack.c.bf16 %v1008_v5, %v1007_v3  ;;  %v1009_v7 = vld [vmem:[%s2553_s1 + $0x160] sm:$0xff]  ;;  %v1010_v8 = vld [vmem:[%s2553_s1 + $0x168] sm:$0xff]  ;;  %v1011_v15 = vld [vmem:[%s2553_s1 + $0x170] sm:$0xff] }
  0x11   :  { %1673 = vmatprep.subr.bf16.mxu0 %v1909_v0  ;;  %v1728_v9 = vpack.c.bf16 %v1010_v8, %v1009_v7  ;;  %v978_v10 = vld [vmem:[%s2555_s2] ss:$0 sm:$0xff]  ;;  %v1012_v16 = vld [vmem:[%s2553_s1 + $0x178] sm:$0xff]  ;;  %v1016_v19 = vld [vmem:[%s2553_s1 + $0x188] sm:$0xff] }
  0x12   :  { %1696 = vmatpush3.bf16.msra.mxu1 %v1695_v30  ;;  %v1731_v17 = vpack.c.bf16 %v1012_v16, %v1011_v15  ;;  %v1015_v18 = vld [vmem:[%s2553_s1 + $0x180] sm:$0xff]  ;;  %v1017_v20 = vld [vmem:[%s2553_s1 + $0x190] sm:$0xff]  ;;  %v1018_v22 = vld [vmem:[%s2553_s1 + $0x198] sm:$0xff] }
  0x13   :  { %1697 = vmatprep.subr.bf16.mxu1 %v1909_v0  ;;  %v1734_v21 = vpack.c.bf16 %v1016_v19, %v1015_v18  ;;  %v1737_v23 = vpack.c.bf16 %v1018_v22, %v1017_v20  ;;  %v1019_v24 = vld [vmem:[%s2553_s1 + $0x1a0] sm:$0xff]  ;;  %v1020_v25 = vld [vmem:[%s2553_s1 + $0x1a8] sm:$0xff]  ;;  %v1022_v28 = vld [vmem:[%s2553_s1 + $0x1b8] sm:$0xff] }
  0x14   :  { %1675 = vmatpush3.bf16.msra.mxu0 %v1674_v27  ;;  %v1740_v26 = vpack.c.bf16 %v1020_v25, %v1019_v24  ;;  %v1021_v27 = vld [vmem:[%s2553_s1 + $0x1b0] sm:$0xff]  ;;  %v1023_v30 = vld [vmem:[%s2553_s1 + $0x1c0] sm:$0xff]  ;;  %v1024_v31 = vld [vmem:[%s2553_s1 + $0x1c8] sm:$0xff] }
  0x15   :  { %1676 = vmatprep.subr.bf16.mxu0 %v1909_v0  ;;  %v1743_v29 = vpack.c.bf16 %v1022_v28, %v1021_v27  ;;  %v1746_v32 = vpack.c.bf16 %v1024_v31, %v1023_v30  ;;  %v1026_v34 = vld [vmem:[%s2553_s1 + $0x1d8] sm:$0xff]  ;;  %v1028_v37 = vld [vmem:[%s2553_s1 + $0x1e8] sm:$0xff]  ;;  %v1029_v44 = vld [vmem:[%s2553_s1 + $0x1f0] sm:$0xff] }
  0x16   :  { %1699 = vmatpush3.bf16.msra.mxu1 %v1698_v36  ;;  %v1027_v36 = vld [vmem:[%s2553_s1 + $0x1e0] sm:$0xff]  ;;  %v1034_v48 = vld [vmem:[%s2553_s1 + $0x208] sm:$0xff]  ;;  %v1035_v49 = vld [vmem:[%s2553_s1 + $0x210] sm:$0xff] }
  0x17   :  { %1700 = vmatprep.subr.bf16.mxu1 %v1909_v0  ;;  %v1752_v38 = vpack.c.bf16 %v1028_v37, %v1027_v36  ;;  %v1036_v51 = vld [vmem:[%s2553_s1 + $0x218] sm:$0xff]  ;;  %v1037_v53 = vld [vmem:[%s2553_s1 + $0x220] sm:$0xff]  ;;  %v1042_v60 = vld [vmem:[%s2553_s1 + $0x248] sm:$0xff] }
  0x18   :  { %1678 = vmatpush3.bf16.msra.mxu0 %v1677_v33  ;;  %v1025_v33 = vld [vmem:[%s2553_s1 + $0x1d0] sm:$0xff]  ;;  %v1761_v52 = vpack.c.bf16 %v1036_v51, %v1035_v49  ;;  %v1040_v57 = vld [vmem:[%s2553_s1 + $0x238] sm:$0xff]  ;;  %v1046_v3 = vld [vmem:[%s2553_s1 + $0x268] sm:$0xff] }
  0x19   :  { %1679 = vmatprep.subr.bf16.mxu0 %v1909_v0  ;;  %v1749_v35 = vpack.c.bf16 %v1026_v34, %v1025_v33  ;;  %v1044_v63 = vld [vmem:[%s2553_s1 + $0x258] sm:$0xff]  ;;  %v1053_v15 = vld [vmem:[%s2553_s1 + $0x290] sm:$0xff]  ;;  %v1055_v19 = vld [vmem:[%s2553_s1 + $0x2a0] sm:$0xff] }
  0x1a   :  { %1702 = vmatpush3.bf16.msra.mxu1 %v1701_v42  ;;  %v1056_v20 = vld [vmem:[%s2553_s1 + $0x2a8] sm:$0xff]  ;;  %v1057_v22 = vld [vmem:[%s2553_s1 + $0x2b0] sm:$0xff]  ;;  %v1059_v25 = vld [vmem:[%s2553_s1 + $0x2c0] sm:$0xff] }
  0x1b   :  { %1703 = vmatprep.subr.bf16.mxu1 %v1909_v0  ;;  %v1061_v28 = vld [vmem:[%s2553_s1 + $0x2d0] sm:$0xff]  ;;  %v1063_v31 = vld [vmem:[%s2553_s1 + $0x2e0] sm:$0xff]  ;;  %v1070_v36 = vld [vmem:[%s2553_s1 + $0x308] sm:$0xff] }
  0x1c   :  { %1681 = vmatpush3.bf16.msra.mxu0 %v1680_v39  ;;  %v996_v39 = vld [vmem:[%s2555_s2 + $0x1] ss:$0 sm:$0xff]  ;;  %v1032_v34 = vld [vmem:[%s2555_s2 + $0x3] ss:$0 sm:$0xff]  ;;  %v1076_v49 = vld [vmem:[%s2553_s1 + $0x338] sm:$0xff] }
  0x1d   :  { %1682 = vmatprep.subr.bf16.mxu0 %v1909_v0  ;;  %v1077_v51 = vld [vmem:[%s2553_s1 + $0x340] sm:$0xff] }
  0x1e   :  { %1705 = vmatpush3.bf16.msra.mxu1 %v1704_v46 }
  0x1f   :  { %1706 = vmatprep.subr.bf16.mxu1 %v1909_v0 }
  0x20   :  { %1684 = vmatpush3.bf16.msra.mxu0 %v1683_v45  ;;  %v1030_v45 = vld [vmem:[%s2553_s1 + $0x1f8] sm:$0xff] }
  0x21   :  { %1709 = vmatprep.subr.bf16.mxu0 %v1909_v0  ;;  %v1755_v46 = vpack.c.bf16 %v1030_v45, %v1029_v44  ;;  %v1073_v45 = vld [vmem:[%s2553_s1 + $0x320] sm:$0xff] }
  0x22   :  { %1708 = vmatpush3.bf16.msra.mxu1 %v1707_v50 }
  0x23   :  { %1344 = vmatmul.mubr.f32.vlgmr.msra.gmra.mrb[0].mxu0 %v14_v47  ;;  %1733 = vmatprep.subr.bf16.mxu1 %v1909_v0  ;;  %v1033_v47 = vld [vmem:[%s2553_s1 + $0x200] sm:$0xff] }
  0x24   :  { %1413 = vmatprep.mubr.msk.f32.mxu0 %vm1910_vm0, %v1911_v4  ;;  %1711 = vmatpush3.bf16.msra.mxu0 %v1710_v54  ;;  %v1758_v50 = vpack.c.bf16 %v1034_v48, %v1033_v47  ;;  %v1038_v54 = vld [vmem:[%s2553_s1 + $0x228] sm:$0xff]  ;;  %v1075_v48 = vld [vmem:[%s2553_s1 + $0x330] sm:$0xff] }
  0x25   :  { %1712 = vmatprep.subr.bf16.mxu0 %v1909_v0  ;;  %v1764_v55 = vpack.c.bf16 %v1038_v54, %v1037_v53  ;;  %v1079_v54 = vld [vmem:[%s2553_s1 + $0x350] sm:$0xff] }
  0x28   :  { %1714 = vmatpush3.bf16.msra.mxu0 %v1713_v56  ;;  %v1039_v56 = vld [vmem:[%s2553_s1 + $0x230] sm:$0xff] }
  0x29   :  { %1715 = vmatprep.subr.bf16.mxu0 %v1909_v0  ;;  %v1767_v58 = vpack.c.bf16 %v1040_v57, %v1039_v56  ;;  %v1081_v57 = vld [vmem:[%s2553_s1 + $0x360] sm:$0xff] }
  0x2c   :  { %1717 = vmatpush3.bf16.msra.mxu0 %v1716_v59  ;;  %v1041_v59 = vld [vmem:[%s2553_s1 + $0x240] sm:$0xff] }
  0x2d   :  { %1718 = vmatprep.subr.bf16.mxu0 %v1909_v0  ;;  %v1770_v61 = vpack.c.bf16 %v1042_v60, %v1041_v59  ;;  %v1083_v60 = vld [vmem:[%s2553_s1 + $0x370] sm:$0xff] }
  0x30   :  { %1720 = vmatpush3.bf16.msra.mxu0 %v1719_v62  ;;  %v1043_v62 = vld [vmem:[%s2553_s1 + $0x250] sm:$0xff] }
  0x31   :  { %1721 = vmatprep.subr.bf16.mxu0 %v1909_v0  ;;  %v1773_v1 = vpack.c.bf16 %v1044_v63, %v1043_v62  ;;  %v1065_v63 = vld [vmem:[%s2553_s1 + $0x2f0] sm:$0xff] }
  0x34   :  { %1723 = vmatpush3.bf16.msra.mxu0 %v1722_v2  ;;  %v1045_v2 = vld [vmem:[%s2553_s1 + $0x260] sm:$0xff] }
  0x35   :  { %1724 = vmatprep.subr.bf16.mxu0 %v1909_v0  ;;  %v1776_v5 = vpack.c.bf16 %v1046_v3, %v1045_v2  ;;  %v1087_v3 = vld [vmem:[%s2553_s1 + $0x380] sm:$0xff] }
  0x38   :  { %1726 = vmatpush3.bf16.msra.mxu0 %v1725_v6  ;;  %v1014_v6 = vld [vmem:[%s2555_s2 + $0x2] ss:$0 sm:$0xff] }
  0x39   :  { %1727 = vmatprep.subr.bf16.mxu0 %v1909_v0 }
  0x3c   :  { %1729 = vmatpush3.bf16.msra.mxu0 %v1728_v9 }
  0x3d   :  { %1730 = vmatprep.subr.bf16.mxu0 %v1909_v0 }
  0x40   :  { %1732 = vmatpush3.bf16.msra.mxu0 %v1731_v17  ;;  %v1054_v17 = vld [vmem:[%s2553_s1 + $0x298] sm:$0xff] }
  0x41   :  { %1757 = vmatprep.subr.bf16.mxu0 %v1909_v0  ;;  %v1785_v18 = vpack.c.bf16 %v1054_v17, %v1053_v15  ;;  %v1096_v17 = vld [vmem:[%s2553_s1 + $0x3c8] sm:$0xff] }
  0xf6   :  { %v104_v11 = vpop.f32.mrb[0].mxu0 }
  0xf7   :  { %v105_v12 = vadd.f32 %v978_v10, %v104_v11  ;;  %v1345_v13 = vpop.f32.mrb[1].mxu0  ;;  %v1047_v10 = vld [vmem:[%s2553_s1 + $0x270] sm:$0xff]  ;;  %v1048_v11 = vld [vmem:[%s2553_s1 + $0x278] sm:$0xff] }
  0xf8   :  { %v1051_v13 = vld [vmem:[%s2553_s1 + $0x280] sm:$0xff] }
  0xf9   :  { %v108_v14 = vmax.f32 %v105_v12, 0.0  ;;  %v1779_v12 = vpack.c.bf16 %v1048_v11, %v1047_v10  ;;  %v1091_v10 = vld [vmem:[%s2553_s1 + $0x3a0] sm:$0xff]  ;;  %v1092_v11 = vld [vmem:[%s2553_s1 + $0x3a8] sm:$0xff] }
  0xfb   :  { %1379 = vmatmul.mubr.f32.vlgmr.msra.gmra.mrb[0].mxu1 %v108_v14  ;;  %v1052_v14 = vld [vmem:[%s2553_s1 + $0x288] sm:$0xff] }
  0xfc   :  { %1448 = vmatprep.mubr.msk.f32.mxu1 %vm1910_vm0, %v1911_v4  ;;  %1735 = vmatpush3.bf16.msra.mxu1 %v1734_v21  ;;  %v1782_v16 = vpack.c.bf16 %v1052_v14, %v1051_v13  ;;  %v1788_v21 = vpack.c.bf16 %v1056_v20, %v1055_v19  ;;  %v1093_v13 = vld [vmem:[%s2553_s1 + $0x3b0] sm:$0xff]  ;;  %v1094_v14 = vld [vmem:[%s2553_s1 + $0x3b8] sm:$0xff] }
  0xfd   :  { %1736 = vmatprep.subr.bf16.mxu1 %v1909_v0  ;;  %v1839_v15 = vpack.c.bf16 %v1094_v14, %v1093_v13  ;;  %v1097_v19 = vld [vmem:[%s2553_s1 + $0x3d0] sm:$0xff]  ;;  %v1098_v20 = vld [vmem:[%s2553_s1 + $0x3d8] sm:$0xff]  ;;  %v1128_v13 = vld [vmem:[%s2553_s1 + $0x4a8] sm:$0xff] }
 0x100   :  { %1738 = vmatpush3.bf16.msra.mxu1 %v1737_v23  ;;  %v1058_v23 = vld [vmem:[%s2553_s1 + $0x2b8] sm:$0xff] }
 0x101   :  { %1739 = vmatprep.subr.bf16.mxu1 %v1909_v0  ;;  %v1791_v24 = vpack.c.bf16 %v1058_v23, %v1057_v22  ;;  %v1099_v22 = vld [vmem:[%s2553_s1 + $0x3e0] sm:$0xff]  ;;  %v1100_v23 = vld [vmem:[%s2553_s1 + $0x3e8] sm:$0xff] }
 0x104   :  { %1741 = vmatpush3.bf16.msra.mxu1 %v1740_v26  ;;  %v1060_v26 = vld [vmem:[%s2553_s1 + $0x2c8] sm:$0xff] }
 0x105   :  { %1742 = vmatprep.subr.bf16.mxu1 %v1909_v0  ;;  %v1794_v27 = vpack.c.bf16 %v1060_v26, %v1059_v25  ;;  %v1050_v25 = vld [vmem:[%s2555_s2 + $0x4] ss:$0 sm:$0xff] }
 0x108   :  { %1744 = vmatpush3.bf16.msra.mxu1 %v1743_v29  ;;  %v1062_v29 = vld [vmem:[%s2553_s1 + $0x2d8] sm:$0xff] }
 0x109   :  { %1745 = vmatprep.subr.bf16.mxu1 %v1909_v0  ;;  %v1797_v30 = vpack.c.bf16 %v1062_v29, %v1061_v28 }
 0x10c   :  { %1747 = vmatpush3.bf16.msra.mxu1 %v1746_v32  ;;  %v1064_v32 = vld [vmem:[%s2553_s1 + $0x2e8] sm:$0xff] }
 0x10d   :  { %1748 = vmatprep.subr.bf16.mxu1 %v1909_v0  ;;  %v1800_v33 = vpack.c.bf16 %v1064_v32, %v1063_v31  ;;  %v1102_v31 = vld [vmem:[%s2553_s1 + $0x3f8] sm:$0xff] }
 0x110   :  { %1750 = vmatpush3.bf16.msra.mxu1 %v1749_v35  ;;  %v1069_v35 = vld [vmem:[%s2553_s1 + $0x300] sm:$0xff] }
 0x111   :  { %1751 = vmatprep.subr.bf16.mxu1 %v1909_v0 }
 0x114   :  { %1753 = vmatpush3.bf16.msra.mxu1 %v1752_v38 }
 0x115   :  { %1754 = vmatprep.subr.bf16.mxu1 %v1909_v0 }
 0x118   :  { %1756 = vmatpush3.bf16.msra.mxu1 %v1755_v46  ;;  %v1074_v46 = vld [vmem:[%s2553_s1 + $0x328] sm:$0xff] }
 0x119   :  { %1781 = vmatprep.subr.bf16.mxu1 %v1909_v0  ;;  %v1812_v47 = vpack.c.bf16 %v1074_v46, %v1073_v45 }
 0x1ce   :  { %v200_v40 = vpop.f32.mrb[0].mxu1 }
 0x1cf   :  { %v201_v41 = vadd.f32 %v996_v39, %v200_v40  ;;  %v1380_v42 = vpop.f32.mrb[1].mxu1  ;;  %v1806_v40 = vpack.c.bf16 %v1070_v36, %v1069_v35  ;;  %v1107_v35 = vld [vmem:[%s2553_s1 + $0x410] sm:$0xff] }
 0x1d0   :  { %v1071_v42 = vld [vmem:[%s2553_s1 + $0x310] sm:$0xff] }
 0x1d1   :  { %v204_v43 = vmax.f32 %v201_v41, 0.0 }
 0x1d3   :  { %1414 = vmatmul.mubr.f32.vlgmr.msra.gmra.mrb[2].mxu0 %v204_v43  ;;  %v1072_v43 = vld [vmem:[%s2553_s1 + $0x318] sm:$0xff] }
 0x1d4   :  { %1483 = vmatprep.mubr.msk.f32.mxu0 %vm1910_vm0, %v1911_v4  ;;  %1759 = vmatpush3.bf16.msra.mxu0 %v1758_v50  ;;  %v1809_v44 = vpack.c.bf16 %v1072_v43, %v1071_v42  ;;  %v1815_v50 = vpack.c.bf16 %v1076_v49, %v1075_v48  ;;  %v1111_v42 = vld [vmem:[%s2553_s1 + $0x430] sm:$0xff]  ;;  %v1112_v43 = vld [vmem:[%s2553_s1 + $0x438] sm:$0xff]  ;;  %v1113_v49 = vld [vmem:[%s2553_s1 + $0x440] sm:$0xff] }
 0x1d5   :  { %1760 = vmatprep.subr.bf16.mxu0 %v1909_v0  ;;  %v1863_v46 = vpack.c.bf16 %v1112_v43, %v1111_v42 }
 0x1d8   :  { %1762 = vmatpush3.bf16.msra.mxu0 %v1761_v52  ;;  %v1078_v52 = vld [vmem:[%s2553_s1 + $0x348] sm:$0xff] }
 0x1d9   :  { %1763 = vmatprep.subr.bf16.mxu0 %v1909_v0  ;;  %v1818_v53 = vpack.c.bf16 %v1078_v52, %v1077_v51  ;;  %v1115_v52 = vld [vmem:[%s2553_s1 + $0x450] sm:$0xff] }
 0x1dc   :  { %1765 = vmatpush3.bf16.msra.mxu0 %v1764_v55  ;;  %v1080_v55 = vld [vmem:[%s2553_s1 + $0x358] sm:$0xff] }
 0x1dd   :  { %1766 = vmatprep.subr.bf16.mxu0 %v1909_v0  ;;  %v1821_v56 = vpack.c.bf16 %v1080_v55, %v1079_v54  ;;  %v1117_v55 = vld [vmem:[%s2553_s1 + $0x460] sm:$0xff] }
 0x1e0   :  { %1768 = vmatpush3.bf16.msra.mxu0 %v1767_v58  ;;  %v1082_v58 = vld [vmem:[%s2553_s1 + $0x368] sm:$0xff] }
 0x1e1   :  { %1769 = vmatprep.subr.bf16.mxu0 %v1909_v0  ;;  %v1824_v59 = vpack.c.bf16 %v1082_v58, %v1081_v57  ;;  %v1119_v58 = vld [vmem:[%s2553_s1 + $0x470] sm:$0xff] }
 0x1e4   :  { %1771 = vmatpush3.bf16.msra.mxu0 %v1770_v61  ;;  %v1084_v61 = vld [vmem:[%s2553_s1 + $0x378] sm:$0xff] }
 0x1e5   :  { %1772 = vmatprep.subr.bf16.mxu0 %v1909_v0  ;;  %v1827_v62 = vpack.c.bf16 %v1084_v61, %v1083_v60  ;;  %v1086_v61 = vld [vmem:[%s2555_s2 + $0x6] ss:$0 sm:$0xff] }
 0x1e8   :  { %1774 = vmatpush3.bf16.msra.mxu0 %v1773_v1  ;;  %v1066_v1 = vld [vmem:[%s2553_s1 + $0x2f8] sm:$0xff] }
 0x1e9   :  { %1775 = vmatprep.subr.bf16.mxu0 %v1909_v0  ;;  %v1803_v2 = vpack.c.bf16 %v1066_v1, %v1065_v63  ;;  %v1123_v1 = vld [vmem:[%s2553_s1 + $0x480] sm:$0xff] }
 0x1ec   :  { %1777 = vmatpush3.bf16.msra.mxu0 %v1776_v5  ;;  %v1088_v5 = vld [vmem:[%s2553_s1 + $0x388] sm:$0xff] }
 0x1ed   :  { %1778 = vmatprep.subr.bf16.mxu0 %v1909_v0 }
 0x1f0   :  { %1780 = vmatpush3.bf16.msra.mxu0 %v1779_v12  ;;  %v1836_v12 = vpack.c.bf16 %v1092_v11, %v1091_v10  ;;  %v1126_v10 = vld [vmem:[%s2553_s1 + $0x498] sm:$0xff] }
 0x1f1   :  { %1805 = vmatprep.subr.bf16.mxu0 %v1909_v0 }
 0x2a6   :  { %v296_v7 = vpop.f32.mrb[2].mxu0 }
 0x2a7   :  { %v2230_v8 = vadd.f32 %v1014_v6, %v296_v7  ;;  %v1415_v9 = vpop.f32.mrb[3].mxu0  ;;  %v1089_v6 = vld [vmem:[%s2553_s1 + $0x390] sm:$0xff]  ;;  %v1830_v7 = vpack.c.bf16 %v1088_v5, %v1087_v3 }
 0x2a9   :  { %1449 = vmatmul.mubr.f32.vlgmr.msra.gmra.mrb[2].mxu1 %v2230_v8 }
 0x2aa   :  { %1518 = vmatprep.mubr.msk.f32.mxu1 %vm1910_vm0, %v1911_v4  ;;  %1783 = vmatpush3.bf16.msra.mxu1 %v1782_v16  ;;  %v1095_v16 = vld [vmem:[%s2553_s1 + $0x3c0] sm:$0xff] }
 0x2ab   :  { %1784 = vmatprep.subr.bf16.mxu1 %v1909_v0 }
 0x2ae   :  { %1786 = vmatpush3.bf16.msra.mxu1 %v1785_v18  ;;  %v1842_v18 = vpack.c.bf16 %v1096_v17, %v1095_v16  ;;  %v1131_v17 = vld [vmem:[%s2553_s1 + $0x4c0] sm:$0xff] }
 0x2af   :  { %1787 = vmatprep.subr.bf16.mxu1 %v1909_v0 }
 0x2b2   :  { %1789 = vmatpush3.bf16.msra.mxu1 %v1788_v21  ;;  %v1845_v21 = vpack.c.bf16 %v1098_v20, %v1097_v19  ;;  %v1133_v20 = vld [vmem:[%s2553_s1 + $0x4d0] sm:$0xff] }
 0x2b3   :  { %1790 = vmatprep.subr.bf16.mxu1 %v1909_v0 }
 0x2b6   :  { %1792 = vmatpush3.bf16.msra.mxu1 %v1791_v24  ;;  %v1848_v24 = vpack.c.bf16 %v1100_v23, %v1099_v22  ;;  %v1135_v23 = vld [vmem:[%s2553_s1 + $0x4e0] sm:$0xff] }
 0x2b7   :  { %1793 = vmatprep.subr.bf16.mxu1 %v1909_v0 }
 0x2ba   :  { %1795 = vmatpush3.bf16.msra.mxu1 %v1794_v27 }
 0x2bb   :  { %1796 = vmatprep.subr.bf16.mxu1 %v1909_v0 }
 0x2be   :  { %1798 = vmatpush3.bf16.msra.mxu1 %v1797_v30  ;;  %v1101_v30 = vld [vmem:[%s2553_s1 + $0x3f0] sm:$0xff] }
 0x2bf   :  { %1799 = vmatprep.subr.bf16.mxu1 %v1909_v0  ;;  %v1851_v32 = vpack.c.bf16 %v1102_v31, %v1101_v30 }
 0x2c2   :  { %1801 = vmatpush3.bf16.msra.mxu1 %v1800_v33  ;;  %v1105_v33 = vld [vmem:[%s2553_s1 + $0x400] sm:$0xff] }
 0x2c3   :  { %1802 = vmatprep.subr.bf16.mxu1 %v1909_v0 }
 0x2c6   :  { %1804 = vmatpush3.bf16.msra.mxu1 %v1803_v2  ;;  %v1124_v2 = vld [vmem:[%s2553_s1 + $0x488] sm:$0xff] }
 0x2c7   :  { %1853 = vmatprep.subr.bf16.mxu1 %v1909_v0 }
 0x37c   :  { %v391_v37 = vpop.f32.mrb[2].mxu1 }
 0x37d   :  { %v392_v38 = vadd.f32 %v1032_v34, %v391_v37  ;;  %v1450_v39 = vpop.f32.mrb[3].mxu1  ;;  %v1106_v34 = vld [vmem:[%s2553_s1 + $0x408] sm:$0xff]  ;;  %v1108_v37 = vld [vmem:[%s2553_s1 + $0x418] sm:$0xff] }
 0x37e   :  { %v1854_v36 = vpack.c.bf16 %v1106_v34, %v1105_v33  ;;  %v1109_v39 = vld [vmem:[%s2553_s1 + $0x420] sm:$0xff] }
 0x37f   :  { %v395_v41 = vmax.f32 %v392_v38, 0.0  ;;  %v1857_v38 = vpack.c.bf16 %v1108_v37, %v1107_v35 }
 0x381   :  { %1484 = vmatmul.mubr.f32.vlgmr.msra.gmra.mrb[4].mxu0 %v395_v41 }
 0x382   :  { %1807 = vmatpush3.bf16.msra.mxu0 %v1806_v40  ;;  %1553 = vmatprep.mubr.msk.f32.mxu0 %vm1910_vm0, %v1911_v4  ;;  %v1110_v40 = vld [vmem:[%s2553_s1 + $0x428] sm:$0xff] }
 0x383   :  { %1808 = vmatprep.subr.bf16.mxu0 %v1909_v0  ;;  %v1860_v41 = vpack.c.bf16 %v1110_v40, %v1109_v39 }
 0x386   :  { %1810 = vmatpush3.bf16.msra.mxu0 %v1809_v44  ;;  %v1068_v44 = vld [vmem:[%s2555_s2 + $0x5] ss:$0 sm:$0xff] }
 0x387   :  { %1811 = vmatprep.subr.bf16.mxu0 %v1909_v0 }
 0x38a   :  { %1813 = vmatpush3.bf16.msra.mxu0 %v1812_v47 }
 0x38b   :  { %1814 = vmatprep.subr.bf16.mxu0 %v1909_v0 }
 0x38e   :  { %1816 = vmatpush3.bf16.msra.mxu0 %v1815_v50  ;;  %v1114_v50 = vld [vmem:[%s2553_s1 + $0x448] sm:$0xff] }
 0x38f   :  { %1817 = vmatprep.subr.bf16.mxu0 %v1909_v0  ;;  %v1866_v51 = vpack.c.bf16 %v1114_v50, %v1113_v49 }
 0x392   :  { %1819 = vmatpush3.bf16.msra.mxu0 %v1818_v53  ;;  %v1116_v53 = vld [vmem:[%s2553_s1 + $0x458] sm:$0xff] }
 0x393   :  { %1820 = vmatprep.subr.bf16.mxu0 %v1909_v0  ;;  %v1869_v54 = vpack.c.bf16 %v1116_v53, %v1115_v52 }
 0x396   :  { %1822 = vmatpush3.bf16.msra.mxu0 %v1821_v56  ;;  %v1118_v56 = vld [vmem:[%s2553_s1 + $0x468] sm:$0xff] }
 0x397   :  { %1823 = vmatprep.subr.bf16.mxu0 %v1909_v0  ;;  %v1872_v57 = vpack.c.bf16 %v1118_v56, %v1117_v55 }
 0x39a   :  { %1825 = vmatpush3.bf16.msra.mxu0 %v1824_v59  ;;  %v1120_v59 = vld [vmem:[%s2553_s1 + $0x478] sm:$0xff] }
 0x39b   :  { %1826 = vmatprep.subr.bf16.mxu0 %v1909_v0  ;;  %v1875_v60 = vpack.c.bf16 %v1120_v59, %v1119_v58 }
 0x39e   :  { %1828 = vmatpush3.bf16.msra.mxu0 %v1827_v62  ;;  %v1104_v62 = vld [vmem:[%s2555_s2 + $0x7] ss:$0 sm:$0xff] }
 0x39f   :  { %1829 = vmatprep.subr.bf16.mxu0 %v1909_v0  ;;  %v1901_v63 = vadd.f32 %v1104_v62, %v1086_v61 }
 0x3a1   :  { %1554 = vmatmul.mubr.f32.vlgmr.msra.gmra.mrb[6].mxu0 %v2230_v8  ;;  %v1090_v8 = vld [vmem:[%s2553_s1 + $0x398] sm:$0xff] }
 0x3a2   :  { %1588 = vmatprep.mubr.msk.f32.mxu0 %vm1910_vm0, %v1911_v4  ;;  %1831 = vmatpush3.bf16.msra.mxu0 %v1830_v7  ;;  %v1833_v9 = vpack.c.bf16 %v1090_v8, %v1089_v6  ;;  %v1878_v7 = vpack.c.bf16 %v1124_v2, %v1123_v1 }
 0x3a3   :  { %1832 = vmatprep.subr.bf16.mxu0 %v1909_v0 }
 0x3a6   :  { %1834 = vmatpush3.bf16.msra.mxu0 %v1833_v9  ;;  %v1125_v9 = vld [vmem:[%s2553_s1 + $0x490] sm:$0xff] }
 0x3a7   :  { %1835 = vmatprep.subr.bf16.mxu0 %v1909_v0  ;;  %v1881_v11 = vpack.c.bf16 %v1126_v10, %v1125_v9 }
 0x3aa   :  { %1837 = vmatpush3.bf16.msra.mxu0 %v1836_v12  ;;  %v1127_v12 = vld [vmem:[%s2553_s1 + $0x4a0] sm:$0xff] }
 0x3ab   :  { %1838 = vmatprep.subr.bf16.mxu0 %v1909_v0  ;;  %v1884_v14 = vpack.c.bf16 %v1128_v13, %v1127_v12 }
 0x3ae   :  { %1840 = vmatpush3.bf16.msra.mxu0 %v1839_v15  ;;  %v1129_v15 = vld [vmem:[%s2553_s1 + $0x4b0] sm:$0xff] }
 0x3af   :  { %1841 = vmatprep.subr.bf16.mxu0 %v1909_v0 }
 0x3b2   :  { %1843 = vmatpush3.bf16.msra.mxu0 %v1842_v18  ;;  %v1132_v18 = vld [vmem:[%s2553_s1 + $0x4c8] sm:$0xff] }
 0x3b3   :  { %1844 = vmatprep.subr.bf16.mxu0 %v1909_v0  ;;  %v1890_v19 = vpack.c.bf16 %v1132_v18, %v1131_v17 }
 0x3b6   :  { %1846 = vmatpush3.bf16.msra.mxu0 %v1845_v21  ;;  %v1134_v21 = vld [vmem:[%s2553_s1 + $0x4d8] sm:$0xff] }
 0x3b7   :  { %1847 = vmatprep.subr.bf16.mxu0 %v1909_v0  ;;  %v1893_v22 = vpack.c.bf16 %v1134_v21, %v1133_v20 }
 0x3ba   :  { %1849 = vmatpush3.bf16.msra.mxu0 %v1848_v24  ;;  %v1136_v24 = vld [vmem:[%s2553_s1 + $0x4e8] sm:$0xff] }
 0x3bb   :  { %1850 = vmatprep.subr.bf16.mxu0 %v1909_v0 }
 0x3be   :  { %1852 = vmatpush3.bf16.msra.mxu0 %v1851_v32 }
 0x454   :  { %v487_v26 = vpop.f32.mrb[4].mxu0 }
 0x455   :  { %v488_v27 = vadd.f32 %v1050_v25, %v487_v26  ;;  %v1485_v28 = vpop.f32.mrb[5].mxu0  ;;  %v1896_v25 = vpack.c.bf16 %v1136_v24, %v1135_v23  ;;  %v1137_v26 = vld [vmem:[%s2553_s1 + $0x4f0] sm:$0xff] }
 0x457   :  { %v491_v29 = vmax.f32 %v488_v27, 0.0  ;;  %v1138_v27 = vld [vmem:[%s2553_s1 + $0x4f8] sm:$0xff] }
 0x458   :  { %v1899_v28 = vpack.c.bf16 %v1138_v27, %v1137_v26 }
 0x459   :  { %1519 = vmatmul.mubr.f32.vlgmr.msra.gmra.mrb[4].mxu1 %v491_v29  ;;  %v1122_v29 = vld [vmem:[%s2555_s2 + $0x8] ss:$0 sm:$0xff] }
 0x45a   :  { %1623 = vmatprep.mubr.msk.f32.mxu1 %vm1910_vm0, %v1911_v4  ;;  %1855 = vmatpush3.bf16.msra.mxu1 %v1854_v36 }
 0x45b   :  { %1856 = vmatprep.subr.bf16.mxu1 %v1909_v0 }
 0x45e   :  { %1858 = vmatpush3.bf16.msra.mxu1 %v1857_v38 }
 0x45f   :  { %1859 = vmatprep.subr.bf16.mxu1 %v1909_v0 }
 0x462   :  { %1861 = vmatpush3.bf16.msra.mxu1 %v1860_v41 }
 0x463   :  { %1862 = vmatprep.subr.bf16.mxu1 %v1909_v0 }
 0x466   :  { %1864 = vmatpush3.bf16.msra.mxu1 %v1863_v46 }
 0x467   :  { %1865 = vmatprep.subr.bf16.mxu1 %v1909_v0 }
 0x46a   :  { %1867 = vmatpush3.bf16.msra.mxu1 %v1866_v51 }
 0x46b   :  { %1868 = vmatprep.subr.bf16.mxu1 %v1909_v0 }
 0x46e   :  { %1870 = vmatpush3.bf16.msra.mxu1 %v1869_v54 }
 0x46f   :  { %1871 = vmatprep.subr.bf16.mxu1 %v1909_v0 }
 0x472   :  { %1873 = vmatpush3.bf16.msra.mxu1 %v1872_v57 }
 0x473   :  { %1874 = vmatprep.subr.bf16.mxu1 %v1909_v0 }
 0x476   :  { %1876 = vmatpush3.bf16.msra.mxu1 %v1875_v60 }
 0x477   :  { %1877 = vmatprep.subr.bf16.mxu1 %v1909_v0 }
 0x52c   :  { %v583_v45 = vpop.f32.mrb[4].mxu1 }
 0x52d   :  { %v584_v47 = vadd.f32 %v1068_v44, %v583_v45  ;;  %v1520_v48 = vpop.f32.mrb[5].mxu1 }
 0x52f   :  { %1589 = vmatmul.mubr.f32.vlgmr.msra.gmra.mrb[6].mxu0 %v584_v47  ;;  %970 = vrot.lane.b32.xlu0 %v584_v47, %s1912_s0 }
 0x5a1   :  { %v971_v37 = vpop.permute.xlu0 %970 }
 0x602   :  { %v773_v3 = vpop.f32.mrb[6].mxu0 }
 0x603   :  { %v1902_v5 = vadd.f32 %v1901_v63, %v773_v3  ;;  %v1590_v6 = vpop.f32.mrb[7].mxu0 }
 0x605   :  { %v778_v8 = vmax.f32 %v1902_v5, 0.0 }
 0x607   :  { %1624 = vmatmul.mubr.f32.vlgmr.msra.gmra.mrb[6].mxu1 %v778_v8 }
 0x608   :  { %1879 = vmatpush3.bf16.msra.mxu1 %v1878_v7  ;;  %1658 = vmatprep.mubr.msk.f32.mxu1 %vm1910_vm0, %v1911_v4  ;;  %v1130_v4 = vld [vmem:[%s2553_s1 + $0x4b8] sm:$0xff] }
 0x609   :  { %1880 = vmatprep.subr.bf16.mxu1 %v1909_v0  ;;  %v1887_v16 = vpack.c.bf16 %v1130_v4, %v1129_v15 }
 0x60c   :  { %1882 = vmatpush3.bf16.msra.mxu1 %v1881_v11 }
 0x60d   :  { %1883 = vmatprep.subr.bf16.mxu1 %v1909_v0 }
 0x610   :  { %1885 = vmatpush3.bf16.msra.mxu1 %v1884_v14 }
 0x611   :  { %1886 = vmatprep.subr.bf16.mxu1 %v1909_v0 }
 0x614   :  { %1888 = vmatpush3.bf16.msra.mxu1 %v1887_v16 }
 0x615   :  { %1889 = vmatprep.subr.bf16.mxu1 %v1909_v0 }
 0x618   :  { %1891 = vmatpush3.bf16.msra.mxu1 %v1890_v19 }
 0x619   :  { %1892 = vmatprep.subr.bf16.mxu1 %v1909_v0 }
 0x61c   :  { %1894 = vmatpush3.bf16.msra.mxu1 %v1893_v22 }
 0x61d   :  { %1895 = vmatprep.subr.bf16.mxu1 %v1909_v0 }
 0x620   :  { %1897 = vmatpush3.bf16.msra.mxu1 %v1896_v25 }
 0x621   :  { %1898 = vmatprep.subr.bf16.mxu1 %v1909_v0  ;;  %v1140_v0 = vld [vmem:[%s2555_s2 + $0x9] ss:$0 sm:$0xff] }
 0x624   :  { %1900 = vmatpush3.bf16.msra.mxu1 %v1899_v28 }
 0x6da   :  { %v870_v30 = vpop.f32.mrb[6].mxu1 }
 0x6db   :  { %v871_v31 = vadd.f32 %v1122_v29, %v870_v30  ;;  %v1625_v32 = vpop.f32.mrb[7].mxu1 }
 0x6dd   :  { %v874_v33 = vmax.f32 %v871_v31, 0.0 }
 0x6df   :  { %1659 = vmatmul.mubr.f32.vlgmr.msra.gmra.mrb[8].mxu1 %v874_v33 }
 0x7b2   :  { %v966_v34 = vpop.f32.mrb[8].mxu1 }
 0x7b3   :  { %v967_v35 = vadd.f32 %v1140_v0, %v966_v34  ;;  %v1660_v36 = vpop.f32.mrb[9].mxu1 }
 0x7b5   :  { %v972_v38 = vadd.f32 %v971_v37, %v967_v35 }
 0x7b7   :  { %973 = vst [vmem:[%s2556_s3] sm:$0xff] %v972_v38 }

</bundles_post_ra>
